<compile_context>
chip_gen: v7x
topology: tpu7x:2x2x1
jax: 0.10.0
libtpu: 0.0.40
codegen_flags: <defaults>
</compile_context>

<pallas_src>
import jax
import jax.numpy as jnp
from jax.experimental import pallas as pl
from jax.experimental.pallas import tpu as pltpu

_LANE = 128
_MAX_TILE_B = 2048            # max batch lanes per grid step (few, fat steps)
_ONE_HOT_BUDGET = 2 << 20     # bytes budget for the per-step (TV, 2*TB) one-hot


def _round_up(x, m):
    return ((x + m - 1) // m) * m


def prepare_embedding_table(emb_weight):
    """One-time preprocessing, hoisted out of the per-call hot path.

    Transposes the (V, D) nn.Embedding weight to (D, V) so gathered
    activations land with D on sublanes and batch on lanes (lane-dense
    output).  Cache the result; do NOT redo this per forward call.
    """
    return jnp.asarray(emb_weight).T  # (D, V)


def _choose_tiles(B, V):
    # Batch tile: lane-dense, as few grid steps as possible (per-step overhead
    # ~0.35us dominates in the small regime; larger N also fills the MXU).
    tile_b = max(_LANE, min(_MAX_TILE_B, _round_up(B, _LANE)))
    # Vocab (reduction) tile: bound the (tile_v, 2*tile_b) one-hot transient.
    tile_v_cap = max(_LANE, _ONE_HOT_BUDGET // (2 * tile_b * 4))
    if V <= tile_v_cap or V % _LANE != 0:
        # Whole table resident in a single reduction step.  (A non-128-multiple
        # V can only be expressed as a full-extent lane block.)
        # TODO(synk): for vocabularies whose table exceeds VMEM (esp. v7x's
        # 64 MiB/TC, or V beyond a few thousand where the O(V*B) one-hot VPU
        # work dominates), switch to an HBM-resident table (memory_space=
        # pl.ANY) with scalar-prefetched indices + manual double-buffered row
        # DMAs (O(B*D) bytes instead of O(V*B) compute).
        tile_v = V
    else:
        tile_v = min(V, (tile_v_cap // _LANE) * _LANE)
        while V % tile_v != 0:     # find a 128-multiple divisor of V
            tile_v -= _LANE
    return tile_b, tile_v


def _wl_score_kernel(idx_ref, emb_t_ref, out_ref, acc_ref):
    # idx_ref   : (1, 2*TB) int32   lanes [0:TB) = u indices, [TB:2TB) = v indices
    # emb_t_ref : (D, TV)           transposed table slice, vocab ids [k*TV, (k+1)*TV)
    # out_ref   : (1, TB)  f32      lane-dense sigmoid(scores)
    # acc_ref   : (D, 2*TB) f32     gathered [emb_u | emb_v], accumulated over k
    k = pl.program_id(1)
    tv = emb_t_ref.shape[1]
    tb = out_ref.shape[1]

    @pl.when(k == 0)
    def _():
        acc_ref[...] = jnp.zeros_like(acc_ref)

    # Shift the indices into this vocab tile's local range (cheap (1, 2TB) op)
    # so the big (TV, 2TB) iota needs no per-step offset.
    local_idx = idx_ref[...] - k * tv                                   # (1, 2TB)
    vocab_iota = jax.lax.broadcasted_iota(jnp.int32, (tv, 2 * tb), 0)   # (TV, 2TB)
    one_hot = (vocab_iota == local_idx).astype(emb_t_ref.dtype)         # (TV, 2TB)

    # Fused u/v embedding gather on the MXU: (D, TV) @ (TV, 2TB) -> (D, 2TB).
    acc_ref[...] += jnp.dot(emb_t_ref[...], one_hot,
                            preferred_element_type=jnp.float32)

    @pl.when(k == pl.num_programs(1) - 1)
    def _():
        emb_u_t = acc_ref[:, :tb]                                        # (D, TB)
        emb_v_t = acc_ref[:, tb:]                                        # (D, TB)
        prod = emb_u_t * emb_v_t                                         # (D, TB)
        d = prod.shape[0]
        if d >= 128:
            # Wide embeddings: do the D-reduction on the MXU, not the VALU.
            score = jnp.dot(jnp.ones((1, d), prod.dtype), prod,
                            preferred_element_type=jnp.float32)          # (1, TB)
        else:
            score = jnp.sum(prod, axis=0, keepdims=True)                 # (1, TB)
        out_ref[...] = jax.nn.sigmoid(score).astype(out_ref.dtype)


def graph_embedding_forward(wl_idx_u, wl_idx_v, emb_t):
    """Pallas implementation of GraphEmbeddingModel.forward.

    Args:
      wl_idx_u, wl_idx_v: (B,) integer WL label indices.
      emb_t: (D, V) embedding table, pre-transposed via prepare_embedding_table.
    Returns:
      (B,) f32 sigmoid link scores.
    """
    B = wl_idx_u.shape[0]
    D, V = emb_t.shape

    tile_b, tile_v = _choose_tiles(B, V)
    b_pad = pl.cdiv(B, tile_b) * tile_b
    n_b_tiles = b_pad // tile_b
    n_v_tiles = pl.cdiv(V, tile_v)

    # Lane-dense padded index row: per batch tile the layout is [u-tile | v-tile]
    # flattened to a single (1, n_b_tiles * 2 * tile_b) row (padding index 0 is a
    # valid row; its scores are sliced off).
    idx_u_pad = jnp.zeros((b_pad,), jnp.int32).at[:B].set(wl_idx_u.astype(jnp.int32))
    idx_v_pad = jnp.zeros((b_pad,), jnp.int32).at[:B].set(wl_idx_v.astype(jnp.int32))
    idx_cat = jnp.concatenate(
        [idx_u_pad.reshape(n_b_tiles, tile_b), idx_v_pad.reshape(n_b_tiles, tile_b)],
        axis=1,
    ).reshape(1, n_b_tiles * 2 * tile_b)

    # Explicit VMEM budget: table buffer(s) + idx/out double buffers + f32
    # accumulator + one-hot/iota transients, with headroom.  Floor at the v5e
    # scoped default, ceiling kept v7x-safe.
    itemsize = jnp.dtype(emb_t.dtype).itemsize
    d_sub = max(8, _round_up(D, 8))
    tv_lane = max(_LANE, _round_up(tile_v, _LANE))
    n_table_bufs = 1 if n_v_tiles == 1 else 2
    table_bytes = n_table_bufs * d_sub * tv_lane * itemsize
    idx_bytes = 2 * 8 * (2 * tile_b) * 4
    out_bytes = 2 * 8 * tile_b * 4
    acc_bytes = d_sub * (2 * tile_b) * 4
    transient_bytes = 3 * _round_up(tile_v, 8) * (2 * tile_b) * 4
    vmem_limit = int(1.5 * (table_bytes + idx_bytes + out_bytes
                            + acc_bytes + transient_bytes)) + (4 << 20)
    vmem_limit = max(16 << 20, min(vmem_limit, 48 << 20))

    # "parallel" only pays off with >=2 batch tiles; with a single tile it is a
    # no-op (and on v7x it would only duplicate table DMA/VMEM per TensorCore).
    batch_sem = "parallel" if n_b_tiles >= 2 else "arbitrary"

    out = pl.pallas_call(
        _wl_score_kernel,
        out_shape=jax.ShapeDtypeStruct((1, b_pad), jnp.float32),
        grid=(n_b_tiles, n_v_tiles),
        in_specs=[
            # Index tiles pipeline along the batch axis, reused across k.
            pl.BlockSpec((1, 2 * tile_b), lambda i, k: (0, i)),
            # Table slices walk the vocab (reduction) axis; single-buffered when
            # the whole table is one resident block (constant index_map).
            pl.BlockSpec((D, tile_v), lambda i, k: (0, k),
                         pipeline_mode=pl.Buffered(1 if n_v_tiles == 1 else 2)),
        ],
        out_specs=pl.BlockSpec((1, tile_b), lambda i, k: (0, i)),
        scratch_shapes=[pltpu.VMEM((D, 2 * tile_b), jnp.float32)],
        compiler_params=pltpu.CompilerParams(
            dimension_semantics=(batch_sem, "arbitrary"),
            vmem_limit_bytes=vmem_limit,
        ),
    )(idx_cat, emb_t)
    return out[0, :B]


def _reference_forward(wl_idx_u, wl_idx_v, emb_weight):
    emb_u = emb_weight[wl_idx_u]
    emb_v = emb_weight[wl_idx_v]
    score = jnp.sum(emb_u * emb_v, axis=1)
    return jax.nn.sigmoid(score)


if __name__ == "__main__":
    key = jax.random.PRNGKey(0)
    k_emb, k_u, k_v = jax.random.split(key, 3)

    num_wl_labels = 64     # V
    embedding_dim = 32     # D
    batch = 8              # B (number of node pairs)

    # nn.Embedding default init is N(0, 1).  Keep f32 to match the reference
    # bit-for-bit; a bf16 table also works (gather weights are exact 0/1).
    emb_weight = jax.random.normal(k_emb, (num_wl_labels, embedding_dim),
                                   dtype=jnp.float32)
    wl_idx_u = jax.random.randint(k_u, (batch,), 0, num_wl_labels, dtype=jnp.int32)
    wl_idx_v = jax.random.randint(k_v, (batch,), 0, num_wl_labels, dtype=jnp.int32)

    # One-time table preparation (outside the per-call hot path).
    emb_t = prepare_embedding_table(emb_weight)

    out = graph_embedding_forward(wl_idx_u, wl_idx_v, emb_t)
    out = jax.block_until_ready(out)

    ref = _reference_forward(wl_idx_u, wl_idx_v, emb_weight)
    assert out.shape == (batch,)
    assert jnp.allclose(out, ref, atol=1e-5, rtol=1e-5)

    print("KERNEL_OK")
</pallas_src>

<mosaic_0001>
module attributes {stable_mosaic.version = 11 : i64} {
  func.func @_wl_score_kernel(%arg0: i32, %arg1: i32, %arg2: memref<1x256xi32, #tpu.memory_space<vmem>>, %arg3: memref<32x64xf32, #tpu.memory_space<vmem>>, %arg4: memref<1x128xf32, #tpu.memory_space<vmem>>, %arg5: memref<32x256xf32, #tpu.memory_space<vmem>>) attributes {dimension_semantics = [#tpu.dimension_semantics<arbitrary>, #tpu.dimension_semantics<arbitrary>], iteration_bounds = array<i64: 1, 1>, scalar_prefetch = 0 : i64, scratch_operands = 1 : i64, tpu.core_type = #tpu.core_type<tc>, window_params = [{transform_indices = @transform_0, window_bounds = array<i64: 1, 256>}, {pipeline_mode = #tpu.pipeline_mode<synchronous>, transform_indices = @transform_1, window_bounds = array<i64: 32, 64>}, {transform_indices = @transform_2, window_bounds = array<i64: 1, 128>}]} {
    %c0_i32 = arith.constant 0 : i32
    %0 = arith.cmpi eq, %arg1, %c0_i32 : i32
    %1 = arith.extui %0 : i1 to i32
    %c0_i32_0 = arith.constant 0 : i32
    %2 = arith.cmpi ne, %1, %c0_i32_0 : i32
    scf.if %2 {
      %cst_10 = arith.constant 0.000000e+00 : f32
      %20 = vector.broadcast %cst_10 : f32 to vector<32x256xf32>
      %c0_11 = arith.constant 0 : index
      %c0_12 = arith.constant 0 : index
      %21 = vector.load %arg5[%c0_11, %c0_12] : memref<32x256xf32, #tpu.memory_space<vmem>>, vector<32x256xf32>
      tpu.vector_store %arg5[%c0_11, %c0_12], %20 {strides = array<i32>} : memref<32x256xf32, #tpu.memory_space<vmem>>, vector<32x256xf32>,
    } else {
    }
    %c0 = arith.constant 0 : index
    %c0_1 = arith.constant 0 : index
    %3 = vector.load %arg2[%c0, %c0_1] : memref<1x256xi32, #tpu.memory_space<vmem>>, vector<1x256xi32>
    %c64_i32 = arith.constant 64 : i32
    %4 = arith.muli %arg1, %c64_i32 : i32
    %5 = vector.broadcast %4 : i32 to vector<1x256xi32>
    %6 = arith.subi %3, %5 : vector<1x256xi32>
    %7 = tpu.iota {dimensions = array<i32: 0>} : vector<64x256xi32>
    %8 = vector.broadcast %6 : vector<1x256xi32> to vector<64x256xi32>
    %9 = arith.cmpi eq, %7, %8 : vector<64x256xi32>
    %10 = arith.extui %9 : vector<64x256xi1> to vector<64x256xi32>
    %11 = arith.sitofp %10 : vector<64x256xi32> to vector<64x256xf32>
    %c0_2 = arith.constant 0 : index
    %c0_3 = arith.constant 0 : index
    %12 = vector.load %arg5[%c0_2, %c0_3] : memref<32x256xf32, #tpu.memory_space<vmem>>, vector<32x256xf32>
    %c0_4 = arith.constant 0 : index
    %c0_5 = arith.constant 0 : index
    %13 = vector.load %arg3[%c0_4, %c0_5] : memref<32x64xf32, #tpu.memory_space<vmem>>, vector<32x64xf32>
    %cst = arith.constant dense<0.000000e+00> : vector<32x256xf32>
    %14 = tpu.matmul %13, %11, %cst {dimension_numbers = #tpu.dot_dimension_numbers<[1], [0], [0], [1], [0, 0, 1, 1], [], []>} : vector<32x64xf32>, vector<64x256xf32>, vector<32x256xf32> -> vector<32x256xf32>
    %15 = arith.addf %12, %14 : vector<32x256xf32>
    %c0_6 = arith.constant 0 : index
    %c0_7 = arith.constant 0 : index
    %16 = vector.load %arg5[%c0_6, %c0_7] : memref<32x256xf32, #tpu.memory_space<vmem>>, vector<32x256xf32>
    tpu.vector_store %arg5[%c0_6, %c0_7], %15 {strides = array<i32>} : memref<32x256xf32, #tpu.memory_space<vmem>>, vector<32x256xf32>,
    %c0_i32_8 = arith.constant 0 : i32
    %17 = arith.cmpi eq, %arg1, %c0_i32_8 : i32
    %18 = arith.extui %17 : i1 to i32
    %c0_i32_9 = arith.constant 0 : i32
    %19 = arith.cmpi ne, %18, %c0_i32_9 : i32
    scf.if %19 {
      %c0_10 = arith.constant 0 : index
      %c0_11 = arith.constant 0 : index
      %20 = vector.load %arg5[%c0_10, %c0_11] : memref<32x256xf32, #tpu.memory_space<vmem>>, vector<32x128xf32>
      %c0_12 = arith.constant 0 : index
      %c128 = arith.constant 128 : index
      %21 = vector.load %arg5[%c0_12, %c128] : memref<32x256xf32, #tpu.memory_space<vmem>>, vector<32x128xf32>
      %22 = arith.mulf %20, %21 : vector<32x128xf32>
      %cst_13 = arith.constant dense<0.000000e+00> : vector<128xf32>
      %23 = vector.multi_reduction <add>, %22, %cst_13 [0] : vector<32x128xf32> to vector<128xf32>
      %24 = vector.shape_cast %23 : vector<128xf32> to vector<1x128xf32>
      %25 = arith.negf %24 : vector<1x128xf32>
      %26 = math.exp %25 : vector<1x128xf32>
      %cst_14 = arith.constant 1.000000e+00 : f32
      %27 = vector.broadcast %cst_14 : f32 to vector<1x128xf32>
      %28 = arith.addf %27, %26 : vector<1x128xf32>
      %29 = arith.divf %27, %28 : vector<1x128xf32>
      %c0_15 = arith.constant 0 : index
      %c0_16 = arith.constant 0 : index
      %30 = vector.load %arg4[%c0_15, %c0_16] : memref<1x128xf32, #tpu.memory_space<vmem>>, vector<1x128xf32>
      tpu.vector_store %arg4[%c0_15, %c0_16], %29 {strides = array<i32>} : memref<1x128xf32, #tpu.memory_space<vmem>>, vector<1x128xf32>,
    } else {
    }
    return
  }
  func.func @transform_0(%arg0: i32, %arg1: i32) -> (i32, i32) {
    %c0_i32 = arith.constant 0 : i32
    %c0_i32_0 = arith.constant 0 : i32
    return %c0_i32, %arg0 : i32, i32
  }
  func.func @transform_1(%arg0: i32, %arg1: i32) -> (i32, i32) {
    %c0_i32 = arith.constant 0 : i32
    %c0_i32_0 = arith.constant 0 : i32
    return %c0_i32, %arg1 : i32, i32
  }
  func.func @transform_2(%arg0: i32, %arg1: i32) -> (i32, i32) {
    %c0_i32 = arith.constant 0 : i32
    %c0_i32_0 = arith.constant 0 : i32
    return %c0_i32, %arg0 : i32, i32
  }
}

</mosaic_0001>

<bundles_post_ra>
// kernel: tpu_custom_call.1
= control target key start
LH: loop header
LB: loop body
LE: loop exit
PB: predicated region body
PF: predicated region fallthrough
CT: control target
= control target key end

     0   :  { %7 = vsyncpa [#allocation4], 0  ;;  %s509_s0 = inlined_call_operand.hbm [shape: s32[1,256], index: 0, kind: input, shape index: {}]   ;;  %s510_s1 = inlined_call_operand.hbm [shape: f32[32,64], index: 1, kind: input, shape index: {}]   ;;  %s511_s2 = inlined_call_operand.hbm [shape: f32[1,128], index: 2, kind: output, shape index: {}]  }
   0x1   :  { %8 = vsyncpa [#allocation7], 0 }
   0x2   :  { %9 = vsyncpa [#allocation5], 0  ;;  %s440_s9 = smov [#allocation3]   ;;  %s441_s11 = smov [#allocation6]  }
   0x3   :  { %s16_s10 = sshll.u32 %s440_s9, 4  ;;  %s25_s12 = sshll.u32 %s441_s11, 4  ;;  %s17_s10 = int_to_ptr.vmem [resolvable:$true] %s16_s10  ;;  %s462_s12 = int_to_ptr.vmem [resolvable:$true] %s25_s12 }
   0x4   :  { %s368_s15 = scalar_lea.hbm %s509_s0, 32 }
   0x5   :  { %p369_p0 = scmp.ne.s32.totalorder %s509_s0, %s368_s15  ;;  %p372_p1 = scmp.lt.u32.totalorder %s368_s15, %s509_s0 }
   0x7   :  { %p374_p2 = pnand %p372_p1, %p369_p0 }
   0x9   :  { %377 = shalt.err (!%p374_p2)
}
   0xa   :  { %s378_s20 = scalar_lea.vmem %s17_s10, 32  ;;  %p383_p4 = scmp.lt.s32.totalorder %s17_s10, %s17_s10 }
   0xb   :  { %p379_p3 = scmp.ne.s32.totalorder %s17_s10, %s378_s20  ;;  %p384_p5 = scmp.lt.s32.totalorder %s378_s20, %s378_s20 }
   0xd   :  { %p385_p6 = por %p384_p5, %p383_p4 }
   0xf   :  { %p386_p7 = pnand %p385_p6, %p379_p3 }
  0x11   :  { %389 = shalt.err (!%p386_p7)
}
  0x12   :  { %19 = dma.hbm_to_vmem [thread:$0]  %s509_s0, 32, %s17_s10, [#allocation4]  }
  0x13   :  { %s390_s25 = scalar_lea.hbm %s510_s1, 512 }
  0x14   :  { %p391_p8 = scmp.ne.s32.totalorder %s510_s1, %s390_s25  ;;  %p394_p9 = scmp.lt.u32.totalorder %s390_s25, %s510_s1 }
  0x16   :  { %p396_p10 = pnand %p394_p9, %p391_p8 }
  0x18   :  { %399 = shalt.err (!%p396_p10)
}
  0x19   :  { %s400_s30 = scalar_lea.vmem %s462_s12, 512  ;;  %p405_p12 = scmp.lt.s32.totalorder %s462_s12, %s462_s12 }
  0x1a   :  { %p401_p11 = scmp.ne.s32.totalorder %s462_s12, %s400_s30  ;;  %p406_p13 = scmp.lt.s32.totalorder %s400_s30, %s400_s30 }
  0x1c   :  { %p407_p0 = por %p406_p13, %p405_p12 }
  0x1e   :  { %p408_p1 = pnand %p407_p0, %p401_p11 }
  0x20   :  { %411 = shalt.err (!%p408_p1)
}
  0x21   :  { %s442_s0 = smov 128   ;;  %s443_s3 = smov 8  }
  0x22   :  { %31 = dma.hbm_to_vmem [thread:$0]  %s510_s1, 512, %s462_s12, [#allocation7], %s442_s0, %s442_s0, %s443_s3  }
  0x23   :  { %434 = dma.done.wait [#allocation4], 32  }
  0x24   :  { %435 = vsyncadd [#allocation4], 4294967264 }
  0x25   :  { %436 = dma.done.wait [#allocation7], 512  }
  0x26   :  { %437 = vsyncadd [#allocation7], 4294966784  ;;  %v54_v0 = vlaneseq  ;;  %v444_v1 = vmov 0.0   ;;  %v50_v6 = vld [vmem:[#allocation3] sm:$0x3]  ;;  %v127_v16 = vld [vmem:[#allocation6] sm:$0xff] }
  0x27   :  { %208 = vmatprep.mubr.f32.mxu0 %v444_v1  ;;  %220 = vmatprep.mubr.f32.mxu1 %v444_v1  ;;  %v445_v13 = vmov 1.0|1.0   ;;  %v129_v17 = vld [vmem:[#allocation6 + $0x10] sm:$0xff]  ;;  %v128_v18 = vld [vmem:[#allocation6 + $0x8] sm:$0xff]  ;;  %v130_v19 = vld [vmem:[#allocation6 + $0x18] sm:$0xff]  ;;  %s446_s1 = smov [#allocation8]  }
  0x28   :  { %v55_v2 = vshrl.u32 %v54_v0, 7  ;;  %s286_s6 = sshll.u32 %s446_s1, 4  ;;  %s287_s6 = int_to_ptr.vmem [resolvable:$true] %s286_s6 }
  0x29   :  { %s412_s7 = scalar_lea.vmem %s287_s6, 16  ;;  %s416_s8 = scalar_lea.vmem %s287_s6, 32 }
  0x2a   :  { %v69_v3 = vsub.s32 1, %v55_v2  ;;  %v65_v4 = vsub.s32 0, %v55_v2  ;;  %v56_v5 = vadd.s32 8, %v55_v2  ;;  %v57_v7 = vadd.s32 16, %v55_v2  ;;  %p413_p2 = scmp.ne.s32.totalorder %s287_s6, %s412_s7  ;;  %p417_p3 = scmp.lt.s32.totalorder %s287_s6, %s287_s6 }
  0x2b   :  { %v58_v8 = vadd.s32 24, %v55_v2  ;;  %v59_v11 = vadd.s32 32, %v55_v2  ;;  %v60_v12 = vadd.s32 40, %v55_v2  ;;  %v61_v14 = vadd.s32 48, %v55_v2  ;;  %p418_p4 = scmp.lt.s32.totalorder %s416_s8, %s412_s7 }
  0x2c   :  { %v70_v9 = vrot.slane %v50_v6, %v69_v3  ;;  %v66_v10 = vrot.slane %v50_v6, %v65_v4  ;;  %v62_v15 = vadd.s32 56, %v55_v2 }
  0x2d   :  { %p419_p5 = por %p418_p4, %p417_p3 }
  0x2e   :  { %vm72_vm0 = vcmp.eq.s32.totalorder %v55_v2, %v70_v9  ;;  %vm74_vm1 = vcmp.eq.s32.totalorder %v56_v5, %v70_v9  ;;  %vm71_vm2 = vcmp.eq.s32.totalorder %v55_v2, %v66_v10  ;;  %vm73_vm3 = vcmp.eq.s32.totalorder %v56_v5, %v66_v10 }
  0x2f   :  { %vm333_vm4 = vmpackc.low %vm74_vm1, %vm72_vm0  ;;  %vm76_vm5 = vcmp.eq.s32.totalorder %v57_v7, %v70_v9  ;;  %vm78_vm6 = vcmp.eq.s32.totalorder %v58_v8, %v70_v9  ;;  %vm75_vm7 = vcmp.eq.s32.totalorder %v57_v7, %v66_v10  ;;  %vm77_vm8 = vcmp.eq.s32.totalorder %v58_v8, %v66_v10  ;;  %p420_p6 = pnand %p419_p5, %p413_p2 }
  0x30   :  { %334 = vmatprep.subr.msk.bf16.mxu0 %vm333_vm4, %v445_v13  ;;  %vm335_vm9 = vmpackc.low %vm73_vm3, %vm71_vm2  ;;  %349 = vmatprep.subr.msk.bf16.mxu1 %vm333_vm4, %v445_v13  ;;  %vm80_vm10 = vcmp.eq.s32.totalorder %v59_v11, %v70_v9  ;;  %vm82_vm11 = vcmp.eq.s32.totalorder %v60_v12, %v70_v9  ;;  %vm79_vm15 = vcmp.eq.s32.totalorder %v59_v11, %v66_v10 }
  0x31   :  { %336 = vmatpush1.bf16.msk.msra.mxu0 %vm335_vm9, %v445_v13  ;;  %353 = vmatpush1.bf16.msk.msra.mxu1 %vm335_vm9, %v445_v13  ;;  %vm337_vm12 = vmpackc.low %vm78_vm6, %vm76_vm5  ;;  %vm81_vm0 = vcmp.eq.s32.totalorder %v60_v12, %v66_v10  ;;  %vm84_vm1 = vcmp.eq.s32.totalorder %v61_v14, %v70_v9  ;;  %vm86_vm2 = vcmp.eq.s32.totalorder %v62_v15, %v70_v9 }
  0x32   :  { %338 = vmatprep.subr.msk.bf16.mxu0 %vm337_vm12, %v445_v13  ;;  %vm339_vm13 = vmpackc.low %vm77_vm8, %vm75_vm7  ;;  %350 = vmatprep.subr.msk.bf16.mxu1 %vm337_vm12, %v445_v13  ;;  %vm83_vm9 = vcmp.eq.s32.totalorder %v61_v14, %v66_v10  ;;  %vm85_vm5 = vcmp.eq.s32.totalorder %v62_v15, %v66_v10  ;;  %vm131_vm7 = vcmask 523264  }
  0x33   :  { %vm341_vm14 = vmpackc.low %vm82_vm11, %vm80_vm10 }
  0x34   :  { %vm343_vm3 = vmpackc.low %vm81_vm0, %vm79_vm15 }
  0x35   :  { %340 = vmatpush1.bf16.msk.msra.mxu0 %vm339_vm13, %v445_v13  ;;  %354 = vmatpush1.bf16.msk.msra.mxu1 %vm339_vm13, %v445_v13  ;;  %vm345_vm4 = vmpackc.low %vm86_vm2, %vm84_vm1 }
  0x36   :  { %342 = vmatprep.subr.msk.bf16.mxu0 %vm341_vm14, %v445_v13  ;;  %351 = vmatprep.subr.msk.bf16.mxu1 %vm341_vm14, %v445_v13  ;;  %vm347_vm6 = vmpackc.low %vm85_vm5, %vm83_vm9 }
  0x39   :  { %344 = vmatpush1.bf16.msk.msra.mxu0 %vm343_vm3, %v445_v13  ;;  %355 = vmatpush1.bf16.msk.msra.mxu1 %vm343_vm3, %v445_v13 }
  0x3a   :  { %346 = vmatprep.subr.msk.bf16.mxu0 %vm345_vm4, %v445_v13  ;;  %352 = vmatprep.subr.msk.bf16.mxu1 %vm345_vm4, %v445_v13 }
  0x3d   :  { %348 = vmatpush1.bf16.msk.msra.mxu0 %vm347_vm6, %v445_v13  ;;  %356 = vmatpush1.bf16.msk.msra.mxu1 %vm347_vm6, %v445_v13 }
  0x40   :  { %328 = vmatmul.mubr.msk.f32.vlgmr.msra.gmra.mrb[0].mxu0 %vm131_vm7, %v127_v16  ;;  %330 = vmatmul.mubr.msk.f32.vlgmr.msra.gmra.mrb[0].mxu1 %vm131_vm7, %v129_v17 }
  0x41   :  { %214 = vmatprep.mubr.f32.mxu0 %v444_v1  ;;  %226 = vmatprep.mubr.f32.mxu1 %v444_v1 }
  0x44   :  { %329 = vmatmul.mubr.msk.f32.gmra.mrb[2].mxu0 %vm131_vm7, %v128_v18  ;;  %331 = vmatmul.mubr.msk.f32.gmra.mrb[2].mxu1 %vm131_vm7, %v130_v19 }
 0x113   :  { %v210_v20 = vpop.f32.mrb[0].mxu0  ;;  %v222_v21 = vpop.f32.mrb[0].mxu1 }
 0x114   :  { %v212_v22 = vpop.f32.mrb[1].mxu0  ;;  %v224_v23 = vpop.f32.mrb[1].mxu1 }
 0x115   :  { %v260_v24 = vmul.f32 %v212_v22, %v210_v20  ;;  %v262_v25 = vmul.f32 %v224_v23, %v222_v21 }
 0x117   :  { %v216_v26 = vpop.f32.mrb[2].mxu0  ;;  %v228_v27 = vpop.f32.mrb[2].mxu1 }
 0x118   :  { %v218_v28 = vpop.f32.mrb[3].mxu0  ;;  %v230_v29 = vpop.f32.mrb[3].mxu1 }
 0x119   :  { %v261_v30 = vmul.f32 %v218_v28, %v216_v26  ;;  %v263_v31 = vmul.f32 %v230_v29, %v228_v27 }
 0x11b   :  { %v264_v32 = vadd.f32 %v261_v30, %v260_v24 }
 0x11d   :  { %v265_v33 = vadd.f32 %v264_v32, %v262_v25 }
 0x11f   :  { %v266_v34 = vadd.f32 %v265_v33, %v263_v31 }
 0x121   :  { %v267_v35 = vrot.slane %v266_v34, 4 }
 0x123   :  { %v268_v36 = vadd.f32 %v267_v35, %v266_v34 }
 0x125   :  { %v269_v37 = vrot.slane %v268_v36, 2 }
 0x127   :  { %v270_v38 = vadd.f32 %v269_v37, %v268_v36 }
 0x129   :  { %v271_v39 = vrot.slane %v270_v38, 1 }
 0x12b   :  { %v272_v40 = vadd.f32 %v271_v39, %v270_v38 }
 0x12d   :  { %v332_v41 = vmul.f32 -1.442695, %v272_v40 }
 0x12f   :  { %364 = vpow2.f32 %v332_v41 }
 0x139   :  { %v365_v42 = vpop.eup %364 }
 0x13a   :  { %v276_v43 = vadd.f32 1.0, %v365_v42 }
 0x13c   :  { %366 = vrcp.f32 %v276_v43 }
 0x146   :  { %v367_v44 = vpop.eup %366 }
 0x147   :  { %279 = vst [vmem:[#allocation8] sm:$0x1] %v367_v44 }
 0x148   :  { %423 = shalt.err (!%p420_p6)
}
 0x149   :  { %s424_s11 = scalar_lea.hbm %s511_s2, 16 }
 0x14a   :  { %p425_p7 = scmp.ne.s32.totalorder %s511_s2, %s424_s11  ;;  %p428_p8 = scmp.lt.u32.totalorder %s424_s11, %s511_s2 }
 0x14c   :  { %p430_p9 = pnand %p428_p8, %p425_p7 }
 0x14e   :  { %433 = shalt.err (!%p430_p9)
}
 0x14f   :  { %289 = dma.vmem_to_hbm [thread:$0]  %s287_s6, 16, %s511_s2, [#allocation5]  }
 0x150   :  { %438 = dma.done.wait [#allocation5], 16  }
 0x151   :  { %439 = vsyncadd [#allocation5], 4294967280 }
 0x152   :  { %293 = vsyncpa [#allocation4], 1 }
 0x153   :  { %294 = vsyncpa [#allocation7], 1 }
 0x154   :  { %295 = vsyncpa [#allocation5], 1 }

</bundles_post_ra>
